<compile_context>
chip_gen: v5e
topology: v5e:2x2
jax: 0.10.0
libtpu: 0.0.40
codegen_flags: <defaults>
</compile_context>

<pallas_src>
import functools

import jax
import jax.numpy as jnp
from jax.experimental import pallas as pl
from jax.experimental.pallas import tpu as pltpu

FC_DIM = 64
LANES = 128


def _round_up(x, m):
    return (x + m - 1) // m * m


def _odeblock_kernel(x_ref, w_ref, b_ref, o_ref):
    # x_ref: [tm, K]  activations in caller dtype (K = fold * D_in)
    # w_ref: [K, N]   bf16 normalized, transposed, negated, block-diag weights
    # b_ref: [1, N]   f32 negated, tiled bias
    # o_ref: [tm, N]  caller dtype
    x = x_ref[...].astype(jnp.bfloat16)            # bf16 MXU operand
    y = jnp.dot(x, w_ref[...], preferred_element_type=jnp.float32)
    y = y + b_ref[...]
    o_ref[...] = jnp.sin(y).astype(o_ref.dtype)


@functools.partial(jax.jit, static_argnames=("block_rows",))
def odeblock_forward(x, W, b, *, block_rows=2048):
    """ODEBlocktemp.forward: sin(-(x @ W_norm.T + b)).

    x: [B, D_in], W: [D_out, D_in] (nn.Linear layout), b: [D_out].
    Returns [B, D_out] in x.dtype.
    """
    B, D_in = x.shape
    D_out, _ = W.shape
    out_dtype = x.dtype

    # ---- hoisted weight normalization (once per call, outside the kernel) ----
    W_f32 = W.astype(jnp.float32)
    absrowsum = jnp.sum(jnp.abs(W_f32), axis=1)                    # [D_out]
    c = jnp.max(absrowsum)
    scale = jnp.minimum(1.0, jax.nn.softplus(c) / absrowsum)
    W_norm = W_f32 * scale[:, None]                                # [D_out, D_in]

    # Fold the leading -1 into weights/bias; pre-transpose so the kernel
    # contracts x[., k] * Wt[k, n] directly (no in-kernel .T / relayout).
    Wt = -W_norm.T                                                 # [D_in, D_out] f32
    b_eff = -(b.astype(jnp.float32))                               # [D_out]

    # ---- lane-dense packing: put `fold` samples per kernel row so the last
    # dim of the kernel's input/output tiles is a multiple of 128 ----
    if D_out < LANES and LANES % D_out == 0 and D_in <= LANES:
        fold = LANES // D_out
    else:
        fold = 1
    K = fold * D_in
    N = fold * D_out

    # Pad by at most fold-1 samples (only when needed) instead of a full-array
    # pad to the grid size; the grid itself handles the partial last tile.
    B_pad = _round_up(B, fold)
    x_in = x if B_pad == B else jnp.pad(x, ((0, B_pad - B), (0, 0)))
    rows = B_pad // fold
    x2 = x_in.reshape(rows, K)                                     # contiguous view

    if fold > 1:
        # Block-diagonal weight: fold independent copies of Wt on the diagonal.
        w_blk = jnp.kron(jnp.eye(fold, dtype=jnp.float32), Wt)     # [K, N]
        b_blk = jnp.tile(b_eff, fold)[None, :]                     # [1, N]
    else:
        w_blk = Wt
        b_blk = b_eff[None, :]
    w_blk = w_blk.astype(jnp.bfloat16)                             # bf16 MXU operand

    # ---- tile sizing: big tiles (>= overhead break-even), 8-aligned, and
    # >= 2 grid steps when there is enough work (v7x megacore) ----
    tm = _round_up(min(block_rows, rows), 8)
    if rows > 16:
        tm = min(tm, _round_up(pl.cdiv(rows, 2), 8))
    tm = max(tm, 8)
    grid = (pl.cdiv(rows, tm),)
    # VMEM note: tm=2048 f32 in + out double-buffered is ~4-5 MiB, well under
    # v5e's 16 MiB scoped default and v7x's 32 MiB; no vmem_limit override needed.

    in_itemsize = jnp.dtype(x2.dtype).itemsize
    out_itemsize = jnp.dtype(out_dtype).itemsize
    cost = pl.CostEstimate(
        flops=2 * rows * K * N,
        transcendentals=rows * N,
        bytes_accessed=(rows * K * in_itemsize
                        + K * N * 2 + N * 4
                        + rows * N * out_itemsize),
    )

    out2 = pl.pallas_call(
        _odeblock_kernel,
        out_shape=jax.ShapeDtypeStruct((rows, N), out_dtype),
        grid=grid,
        in_specs=[
            pl.BlockSpec((tm, K), lambda i: (i, 0)),   # batch-tiled activations
            pl.BlockSpec((K, N), lambda i: (0, 0)),    # weights stay resident
            pl.BlockSpec((1, N), lambda i: (0, 0)),    # bias stays resident
        ],
        out_specs=pl.BlockSpec((tm, N), lambda i: (i, 0)),
        compiler_params=pltpu.CompilerParams(
            dimension_semantics=("parallel",),          # megacore split on v7x
        ),
        cost_estimate=cost,
    )(x2, w_blk, b_blk)

    out = out2.reshape(B_pad, D_out)                    # contiguous view
    if B_pad != B:
        out = out[:B]
    return out


def reference_forward(x, W, b):
    """Pure-JAX reference of ODEBlocktemp.forward for validation."""
    absrowsum = jnp.sum(jnp.abs(W), axis=1)
    c = jnp.max(absrowsum)
    scale = jnp.minimum(1.0, jax.nn.softplus(c) / absrowsum)
    W_norm = W * scale[:, None]
    return jnp.sin(-(x @ W_norm.T + b))


if __name__ == "__main__":
    key = jax.random.PRNGKey(0)
    k_x, k_w, k_b = jax.random.split(key, 3)

    # Small shapes consistent with the module (fc_dim = 64).
    B = 16
    bound = 1.0 / (FC_DIM ** 0.5)
    x = jax.random.normal(k_x, (B, FC_DIM), dtype=jnp.float32)
    W = jax.random.uniform(k_w, (FC_DIM, FC_DIM), minval=-bound, maxval=bound,
                           dtype=jnp.float32)
    b = jax.random.uniform(k_b, (FC_DIM,), minval=-bound, maxval=bound,
                           dtype=jnp.float32)

    # bf16 MXU operands -> loosened tolerance (review note).
    ATOL = RTOL = 2e-2

    out = jax.block_until_ready(odeblock_forward(x, W, b))
    ref = reference_forward(x, W, b)
    assert out.shape == (B, FC_DIM)
    assert out.dtype == x.dtype
    assert jnp.allclose(out, ref, atol=ATOL, rtol=RTOL), "mismatch vs reference"

    # Exercise the fold-padding path with an odd batch (pads 1 sample only).
    x_odd = x[:13]
    out_odd = jax.block_until_ready(odeblock_forward(x_odd, W, b))
    ref_odd = reference_forward(x_odd, W, b)
    assert out_odd.shape == (13, FC_DIM)
    assert jnp.allclose(out_odd, ref_odd, atol=ATOL, rtol=RTOL), "mismatch (odd B)"

    # Exercise a multi-step grid with a partial last tile.
    x_big = jax.random.normal(k_x, (1000, FC_DIM), dtype=jnp.float32)
    out_big = jax.block_until_ready(odeblock_forward(x_big, W, b, block_rows=128))
    ref_big = reference_forward(x_big, W, b)
    assert out_big.shape == (1000, FC_DIM)
    assert jnp.allclose(out_big, ref_big, atol=ATOL, rtol=RTOL), "mismatch (big B)"

    print("KERNEL_OK")
</pallas_src>

<mosaic_0001>
module attributes {stable_mosaic.version = 11 : i64} {
  func.func @_odeblock_kernel(%arg0: i32, %arg1: memref<8x128xf32, #tpu.memory_space<vmem>>, %arg2: memref<128x128xbf16, #tpu.memory_space<vmem>>, %arg3: memref<1x128xf32, #tpu.memory_space<vmem>>, %arg4: memref<8x128xf32, #tpu.memory_space<vmem>>) attributes {dimension_semantics = [#tpu.dimension_semantics<parallel>], iteration_bounds = array<i64: 1>, scalar_prefetch = 0 : i64, scratch_operands = 0 : i64, tpu.core_type = #tpu.core_type<tc>, window_params = [{transform_indices = @transform_0, window_bounds = array<i64: 8, 128>}, {pipeline_mode = #tpu.pipeline_mode<synchronous>, transform_indices = @transform_1, window_bounds = array<i64: 128, 128>}, {pipeline_mode = #tpu.pipeline_mode<synchronous>, transform_indices = @transform_2, window_bounds = array<i64: 1, 128>}, {transform_indices = @transform_3, window_bounds = array<i64: 8, 128>}]} {
    %c0 = arith.constant 0 : index
    %c0_0 = arith.constant 0 : index
    %0 = vector.load %arg1[%c0, %c0_0] : memref<8x128xf32, #tpu.memory_space<vmem>>, vector<8x128xf32>
    %1 = arith.truncf %0 : vector<8x128xf32> to vector<8x128xbf16>
    %c0_1 = arith.constant 0 : index
    %c0_2 = arith.constant 0 : index
    %2 = vector.load %arg2[%c0_1, %c0_2] : memref<128x128xbf16, #tpu.memory_space<vmem>>, vector<128x128xbf16>
    %cst = arith.constant dense<0.000000e+00> : vector<8x128xf32>
    %3 = tpu.matmul %1, %2, %cst {dimension_numbers = #tpu.dot_dimension_numbers<[1], [0], [0], [1], [0, 0, 1, 1], [], []>} : vector<8x128xbf16>, vector<128x128xbf16>, vector<8x128xf32> -> vector<8x128xf32>
    %c0_3 = arith.constant 0 : index
    %c0_4 = arith.constant 0 : index
    %4 = vector.load %arg3[%c0_3, %c0_4] : memref<1x128xf32, #tpu.memory_space<vmem>>, vector<1x128xf32>
    %5 = vector.broadcast %4 : vector<1x128xf32> to vector<8x128xf32>
    %6 = arith.addf %3, %5 : vector<8x128xf32>
    %7 = math.sin %6 : vector<8x128xf32>
    %c0_5 = arith.constant 0 : index
    %c0_6 = arith.constant 0 : index
    %8 = vector.load %arg4[%c0_5, %c0_6] : memref<8x128xf32, #tpu.memory_space<vmem>>, vector<8x128xf32>
    tpu.vector_store %arg4[%c0_5, %c0_6], %7 {strides = array<i32>} : memref<8x128xf32, #tpu.memory_space<vmem>>, vector<8x128xf32>,
    return
  }
  func.func @transform_0(%arg0: i32) -> (i32, i32) {
    %c0_i32 = arith.constant 0 : i32
    %c0_i32_0 = arith.constant 0 : i32
    return %arg0, %c0_i32 : i32, i32
  }
  func.func @transform_1(%arg0: i32) -> (i32, i32) {
    %c0_i32 = arith.constant 0 : i32
    %c0_i32_0 = arith.constant 0 : i32
    %c0_i32_1 = arith.constant 0 : i32
    return %c0_i32, %c0_i32_0 : i32, i32
  }
  func.func @transform_2(%arg0: i32) -> (i32, i32) {
    %c0_i32 = arith.constant 0 : i32
    %c0_i32_0 = arith.constant 0 : i32
    %c0_i32_1 = arith.constant 0 : i32
    return %c0_i32, %c0_i32_0 : i32, i32
  }
  func.func @transform_3(%arg0: i32) -> (i32, i32) {
    %c0_i32 = arith.constant 0 : i32
    %c0_i32_0 = arith.constant 0 : i32
    return %arg0, %c0_i32 : i32, i32
  }
}

</mosaic_0001>

<bundles_post_ra>
// kernel: neg.5
= control target key start
LH: loop header
LB: loop body
LE: loop exit
PB: predicated region body
PF: predicated region fallthrough
CT: control target
= control target key end

     0   :  { %s24_s0 = inlined_call_operand.vmem [shape: f32[64], index: 0, kind: input, shape index: {}]   ;;  %s25_s1 = inlined_call_operand.vmem [shape: f32[64], index: 1, kind: output, shape index: {}]  }
   0x1   :  { %v2_v0 = vld [vmem:[%s24_s0] sm:$0x1] }
   0x2   :  { %v5_v1 = vxor.u32 2147483648, %v2_v0 }
   0x4   :  { %7 = vst [vmem:[%s25_s1] sm:$0x1] %v5_v1 }

// kernel: tile.8
= control target key start
LH: loop header
LB: loop body
LE: loop exit
PB: predicated region body
PF: predicated region fallthrough
CT: control target
= control target key end

     0   :  { %s22_s0 = inlined_call_operand.vmem [shape: f32[64], index: 0, kind: input, shape index: {}]   ;;  %s23_s1 = inlined_call_operand.vmem [shape: f32[2,64], index: 1, kind: output, shape index: {}]  }
   0x1   :  { %v4_v0 = vld [vmem:[%s22_s0] ss:$0 sm:$0xff] }
   0x2   :  { %5 = vst [vmem:[%s23_s1] sm:$0x3] %v4_v0 }

// kernel: tile.9
= control target key start
LH: loop header
LB: loop body
LE: loop exit
PB: predicated region body
PF: predicated region fallthrough
CT: control target
= control target key end

     0   :  { %vm7_vm0 = vcmask 523264   ;;  %vm13_vm1 = vcmask 1048064   ;;  %s39_s0 = inlined_call_operand.vmem [shape: f32[2,64], index: 0, kind: input, shape index: {}]   ;;  %s40_s1 = inlined_call_operand.vmem [shape: f32[1,128], index: 1, kind: output, shape index: {}]  }
   0x1   :  { %v4_v0 = vld [vmem:[%s39_s0] sm:$0x3]  ;;  %s22_s0 = smov 64  }
   0x2   :  { %5 = vst [vmem:[#allocation1] sm:$0x3] %v4_v0 }
   0x9   :  { %v10_v1 = vld [vmem:[#allocation1 + $0x1] sm:$0x1]   ;;  %v6_v2 = vld [vmem:[#allocation1] sm:$0x1]  }
   0xa   :  { %11 = vrot.lane.b32.xlu0 %v10_v1, %s22_s0  ;;  %8 = vst.msk [vmem:[#allocation0] sm:$0x1] %vm7_vm0, %v6_v2  }
  0x7c   :  { %v12_v3 = vpop.permute.xlu0 %11  }
  0x7d   :  { %14 = vst.msk [vmem:[#allocation0] sm:$0x1] %vm13_vm1, %v12_v3  }
  0x84   :  { %v17_v4 = vld [vmem:[#allocation0] sm:$0x1] }
  0x85   :  { %20 = vst [vmem:[%s40_s1] sm:$0x1] %v17_v4 }

// kernel: odeblock_forward.1
= control target key start
LH: loop header
LB: loop body
LE: loop exit
PB: predicated region body
PF: predicated region fallthrough
CT: control target
= control target key end

     0   :  { %v308_v25 = vmov 683565275   ;;  %v309_v27 = vmov 2475754826   ;;  %v310_v30 = vmov 2131351028   ;;  %s424_s1 = inlined_call_operand.vmem [shape: bf16[128,128], index: 1, kind: input, shape index: {}]   ;;  %s425_s2 = inlined_call_operand.vmem [shape: f32[1,128], index: 2, kind: input, shape index: {}]   ;;  %s426_s0 = inlined_call_operand.vmem [shape: f32[8,128], index: 0, kind: input, shape index: {}]   ;;  %s427_s3 = inlined_call_operand.vmem [shape: f32[8,128], index: 3, kind: output, shape index: {}]  }
   0x1   :  { %v299_v0 = vld [vmem:[%s424_s1 + $0x38] sm:$0xff]  ;;  %v298_v1 = vld [vmem:[%s424_s1 + $0x30] sm:$0xff]  ;;  %v297_v2 = vld [vmem:[%s424_s1 + $0x28] sm:$0xff]  ;;  %v311_v33 = vmov 2102212464  }
   0x2   :  { %84 = vmatpush.bf16.msra.mxu0 %v299_v0  ;;  %v296_v3 = vld [vmem:[%s424_s1 + $0x20] sm:$0xff]  ;;  %v295_v4 = vld [vmem:[%s424_s1 + $0x18] sm:$0xff]  ;;  %v294_v5 = vld [vmem:[%s424_s1 + $0x10] sm:$0xff]  ;;  %v312_v36 = vmov 920167782  }
   0x3   :  { %v293_v6 = vld [vmem:[%s424_s1 + $0x8] sm:$0xff]  ;;  %v292_v7 = vld [vmem:[%s424_s1] sm:$0xff]  ;;  %v313_v39 = vmov 1326507024  }
   0x4   :  { %v14_v8 = vld [vmem:[%s426_s0] sm:$0xff] }
   0x5   :  { %v15_v9 = vpack.c.bf16 %v14_v8, %v14_v8  ;;  %v307_v10 = vld [vmem:[%s425_s2] ss:$0 sm:$0xff] }
   0x6   :  { %85 = vmatpush.bf16.msra.mxu0 %v298_v1 }
   0xa   :  { %86 = vmatpush.bf16.msra.mxu0 %v297_v2 }
   0xe   :  { %87 = vmatpush.bf16.msra.mxu0 %v296_v3 }
  0x12   :  { %88 = vmatpush.bf16.msra.mxu0 %v295_v4 }
  0x16   :  { %89 = vmatpush.bf16.msra.mxu0 %v294_v5 }
  0x1a   :  { %90 = vmatpush.bf16.msra.mxu0 %v293_v6 }
  0x1e   :  { %91 = vmatpush.bf16.msra.mxu0 %v292_v7 }
  0x21   :  { %92 = vmatmul.bf16.vlgmr.msra.gmra.mxu0 %v15_v9  ;;  %v314_v9 = vmov 0  }
  0x9e   :  { %v93_v11 = vpop.f32.mrf.mxu0 }
  0x9f   :  { %v365_v12 = vadd.f32 %v307_v10, %v93_v11 }
  0xa1   :  { %v100_v13 = vand.u32 2139095040, %v365_v12  ;;  %v97_v16 = vand.u32 2147483647, %v365_v12  ;;  %vm99_vm12 = vcmp.lt.s32.totalorder %v365_v12, 0 }
  0xa3   :  { %v101_v14 = vshrl.u32 %v100_v13, 23  ;;  %v104_v19 = vand.u32 8388607, %v97_v16  ;;  %vm98_vm13 = vcmp.le.f32.partialorder %v97_v16, 0.7853982 }
  0xa5   :  { %v289_v15 = vadd.s32 4294967169, %v101_v14  ;;  %v105_v23 = vor.u32 8388608, %v104_v19 }
  0xa6   :  { %v95_v17 = vpop.f32.mrf.mxu0 }
  0xa7   :  { %v107_v18 = vadd.s32 1, %v289_v15  ;;  %v382_v46 = vshll.u32 %v105_v23, 8 }
  0xa9   :  { %vm108_vm0 = vcmp.gt.s32.totalorder %v107_v18, 0  ;;  %v146_v55 = vand.u32 65535, %v382_v46  ;;  %v147_v56 = vshrl.u32 %v382_v46, 16 }
  0xaa   :  { %v109_v20 = vsel %vm108_vm0, %v107_v18, 0 }
  0xab   :  { %v111_v21 = vand.u32 31, %v109_v20  ;;  %v373_v24 = vshrl.u32 %v109_v20, 5 }
  0xad   :  { %v371_v22 = vsub.s32 32, %v111_v21  ;;  %v114_v26 = vshll.u32 %v308_v25, %v111_v21  ;;  %v117_v28 = vshll.u32 %v309_v27, %v111_v21  ;;  %v120_v32 = vshll.u32 %v310_v30, %v111_v21 }
  0xae   :  { %v123_v35 = vshll.u32 %v311_v33, %v111_v21  ;;  %v126_v38 = vshll.u32 %v312_v36, %v111_v21  ;;  %vm129_vm1 = vcmp.lt.s32.totalorder %v373_v24, 1  ;;  %vm132_vm2 = vcmp.lt.s32.totalorder %v373_v24, 4 }
  0xaf   :  { %v115_v29 = vshrl.u32 %v309_v27, %v371_v22  ;;  %v118_v31 = vshrl.u32 %v310_v30, %v371_v22  ;;  %v121_v34 = vshrl.u32 %v311_v33, %v371_v22  ;;  %v124_v37 = vshrl.u32 %v312_v36, %v371_v22 }
  0xb0   :  { %v127_v40 = vshrl.u32 %v313_v39, %v371_v22  ;;  %vm131_vm3 = vcmp.lt.s32.totalorder %v373_v24, 3  ;;  %vm130_vm4 = vcmp.lt.s32.totalorder %v373_v24, 2  ;;  %v113_v20 = vshrl.u32 %v308_v25, %v371_v22 }
  0xb1   :  { %v116_v41 = vor.u32 %v115_v29, %v114_v26  ;;  %v119_v42 = vor.u32 %v118_v31, %v117_v28  ;;  %v122_v43 = vor.u32 %v121_v34, %v120_v32  ;;  %v125_v44 = vor.u32 %v124_v37, %v123_v35 }
  0xb2   :  { %v128_v45 = vor.u32 %v127_v40, %v126_v38 }
  0xb3   :  { %v137_v47 = vsel %vm129_vm1, %v116_v41, %v119_v42  ;;  %v141_v48 = vsel %vm129_vm1, %v119_v42, %v122_v43  ;;  %v138_v49 = vsel %vm132_vm2, %v125_v44, 920167782  ;;  %v134_v17 = vsel %vm132_vm2, %v122_v43, 2102212464 }
  0xb4   :  { %v142_v50 = vsel %vm132_vm2, %v128_v45, 1326507024  ;;  %v139_v51 = vsel %vm131_vm3, %v122_v43, %v138_v49  ;;  %v133_v29 = vsel %vm129_vm1, %v113_v20, %v116_v41  ;;  %v135_v30 = vsel %vm131_vm3, %v119_v42, %v134_v17 }
  0xb5   :  { %v143_v52 = vsel %vm131_vm3, %v125_v44, %v142_v50  ;;  %v140_v53 = vsel %vm130_vm4, %v137_v47, %v139_v51  ;;  %v136_v22 = vsel %vm130_vm4, %v133_v29, %v135_v30  ;;  %vm240_vm1 = vweird.f32 %v365_v12 }
  0xb6   :  { %v144_v54 = vsel %vm130_vm4, %v141_v48, %v143_v52  ;;  %v170_v59 = vand.u32 65535, %v140_v53  ;;  %v171_v60 = vshrl.u32 %v140_v53, 16  ;;  %v190_v38 = vmul.u32 %v382_v46, %v136_v22 }
  0xb7   :  { %v148_v57 = vand.u32 65535, %v144_v54  ;;  %v149_v58 = vshrl.u32 %v144_v54, 16 }
  0xb8   :  { %v173_v63 = vmul.u32 %v171_v60, %v146_v55  ;;  %v174_v0 = vmul.u32 %v170_v59, %v147_v56  ;;  %v172_v4 = vmul.u32 %v170_v59, %v146_v55  ;;  %v175_v8 = vmul.u32 %v171_v60, %v147_v56 }
  0xb9   :  { %v151_v61 = vmul.u32 %v149_v58, %v146_v55  ;;  %v152_v62 = vmul.u32 %v148_v57, %v147_v56  ;;  %v150_v1 = vmul.u32 %v148_v57, %v146_v55  ;;  %v153_v3 = vmul.u32 %v149_v58, %v147_v56 }
  0xba   :  { %v176_v5 = vshll.u32 %v173_v63, 16  ;;  %v178_v11 = vshll.u32 %v174_v0, 16  ;;  %v177_v27 = vshrl.u32 %v173_v63, 16  ;;  %v179_v33 = vshrl.u32 %v174_v0, 16 }
  0xbb   :  { %v154_v2 = vshll.u32 %v151_v61, 16  ;;  %v156_v6 = vshll.u32 %v152_v62, 16  ;;  %v155_v21 = vshrl.u32 %v151_v61, 16  ;;  %v157_v31 = vshrl.u32 %v152_v62, 16 }
  0xbc   :  { %vm180_vm6 = vc.u32 %v172_v4, %v176_v5  ;;  %v182_v13 = vadd.s32 %v176_v5, %v172_v4 }
  0xbd   :  { %vm158_vm5 = vc.u32 %v150_v1, %v154_v2  ;;  %v160_v7 = vadd.s32 %v154_v2, %v150_v1  ;;  %v181_v15 = vsel %vm180_vm6, 1, %v314_v9 }
  0xbe   :  { %v159_v10 = vsel %vm158_vm5, 1, %v314_v9  ;;  %v183_v19 = vadd.s32 %v181_v15, %v175_v8  ;;  %vm184_vm8 = vc.u32 %v182_v13, %v178_v11  ;;  %v186_v36 = vadd.s32 %v182_v13, %v178_v11 }
  0xbf   :  { %v161_v14 = vadd.s32 %v159_v10, %v153_v3  ;;  %vm162_vm7 = vc.u32 %v160_v7, %v156_v6  ;;  %v185_v26 = vsel %vm184_vm8, 1, %v314_v9 }
  0xc0   :  { %v163_v18 = vsel %vm162_vm7, 1, %v314_v9  ;;  %v187_v28 = vadd.s32 %v185_v26, %v183_v19 }
  0xc1   :  { %v165_v23 = vadd.s32 %v163_v18, %v161_v14 }
  0xc2   :  { %v188_v34 = vadd.s32 %v187_v28, %v177_v27 }
  0xc3   :  { %v166_v32 = vadd.s32 %v165_v23, %v155_v21 }
  0xc4   :  { %v189_v25 = vadd.s32 %v188_v34, %v179_v33 }
  0xc5   :  { %v167_v35 = vadd.s32 %v166_v32, %v157_v31 }
  0xc6   :  { %v193_v37 = vadd.s32 1, %v189_v25 }
  0xc7   :  { %vm192_vm9 = vc.u32 %v167_v35, %v186_v36  ;;  %v191_v24 = vadd.s32 %v186_v36, %v167_v35 }
  0xc8   :  { %v194_v39 = vsel %vm192_vm9, %v193_v37, %v189_v25 }
  0xc9   :  { %v195_v40 = vadd.s32 %v194_v39, %v190_v38 }
  0xcb   :  { %v196_v41 = vadd.s32 536870912, %v195_v40 }
  0xcd   :  { %v197_v43 = vshrl.u32 %v196_v41, 30 }
  0xcf   :  { %v198_v44 = vshll.u32 %v197_v43, 30  ;;  %v221_v63 = vsub.s32 4, %v197_v43 }
  0xd1   :  { %v199_v42 = vsub.s32 %v195_v40, %v198_v44  ;;  %v222_v4 = vsel %vm99_vm12, %v221_v63, %v197_v43 }
  0xd2   :  { %v224_v7 = vsel %vm98_vm13, 0, %v222_v4 }
  0xd3   :  { %vm200_vm10 = vcmp.lt.s32.totalorder %v199_v42, 0  ;;  %v201_v45 = vsub.s32 0, %v199_v42  ;;  %v241_v13 = vadd.s32 3, %v224_v7 }
  0xd5   :  { %v202_v47 = vsel %vm200_vm10, %v201_v45, %v199_v42  ;;  %v242_v18 = vand.u32 3, %v241_v13 }
  0xd6   :  { %v203_v48 = vclz %v202_v47 }
  0xd7   :  { %vm244_vm14 = vcmp.eq.s32.totalorder %v242_v18, 0  ;;  %vm247_vm15 = vcmp.eq.s32.totalorder %v242_v18, 2  ;;  %vm243_vm0 = vcmp.lt.s32.totalorder %v242_v18, 2 }
  0xd8   :  { %v290_v49 = vadd.s32 4294967294, %v203_v48 }
  0xda   :  { %vm291_vm11 = vcmp.lt.s32.totalorder %v290_v49, 0 }
  0xdb   :  { %v206_v50 = vsel %vm291_vm11, 0, %v290_v49 }
  0xdc   :  { %v207_v51 = vsub.s32 32, %v206_v50  ;;  %v211_v52 = vsub.s32 4294967266, %v206_v50  ;;  %v208_v53 = vshll.u32 %v199_v42, %v206_v50 }
  0xde   :  { %v209_v54 = vshrl.u32 %v191_v24, %v207_v51  ;;  %v212_v55 = vadd.s32 127, %v211_v52 }
  0xe0   :  { %v210_v46 = vor.u32 %v209_v54, %v208_v53  ;;  %v213_v56 = vshll.u32 %v212_v55, 23 }
  0xe2   :  { %v214_v57 = vor.u32 4788187, %v213_v56  ;;  %v217_v59 = vcvt.s32.f32 %v210_v46 }
  0xe4   :  { %v215_v58 = vand.u32 2147483647, %v214_v57 }
  0xe6   :  { %v218_v60 = vmul.f32 %v217_v59, %v215_v58 }
  0xe8   :  { %v219_v61 = vxor.u32 2147483648, %v218_v60 }
  0xea   :  { %v220_v62 = vsel %vm99_vm12, %v219_v61, %v218_v60 }
  0xeb   :  { %v223_v0 = vsel %vm98_vm13, %v365_v12, %v220_v62 }
  0xec   :  { %v225_v1 = vmul.f32 %v223_v0, %v223_v0 }
  0xee   :  { %v226_v2 = vmul.f32 -0.001358992, %v225_v1  ;;  %v233_v3 = vmul.f32 -0.00019511016, %v225_v1 }
  0xf0   :  { %v227_v5 = vadd.f32 0.041655596, %v226_v2  ;;  %v234_v6 = vadd.f32 0.008332121, %v233_v3 }
  0xf2   :  { %v228_v8 = vmul.f32 %v227_v5, %v225_v1  ;;  %v235_v9 = vmul.f32 %v234_v6, %v225_v1 }
  0xf4   :  { %v229_v10 = vadd.f32 -0.4999988, %v228_v8  ;;  %v236_v11 = vadd.f32 -0.16666654, %v235_v9 }
  0xf6   :  { %v230_v14 = vmul.f32 %v229_v10, %v225_v1  ;;  %v237_v15 = vmul.f32 %v236_v11, %v225_v1 }
  0xf8   :  { %v231_v17 = vadd.f32 1.0, %v230_v14  ;;  %v238_v16 = vadd.f32 1.0, %v237_v15 }
  0xfa   :  { %v239_v19 = vmul.f32 %v238_v16, %v223_v0  ;;  %v248_v20 = vxor.u32 2147483648, %v231_v17 }
  0xfc   :  { %v245_v21 = vxor.u32 2147483648, %v239_v19  ;;  %v249_v26 = vsel %vm247_vm15, %v248_v20, %v239_v19 }
  0xfe   :  { %v246_v23 = vsel %vm244_vm14, %v231_v17, %v245_v21 }
  0xff   :  { %v250_v27 = vsel %vm243_vm0, %v246_v23, %v249_v26 }
 0x100   :  { %v251_v28 = vsel %vm240_vm1, nan, %v250_v27 }
 0x101   :  { %252 = vst [vmem:[%s427_s3] sm:$0xff] %v251_v28 }

</bundles_post_ra>
